<compile_context>
chip_gen: v7x
topology: tpu7x:2x2x1
jax: 0.10.0
libtpu: 0.0.40
codegen_flags: <defaults>
</compile_context>

<pallas_src>
import jax
import jax.numpy as jnp
from jax.experimental import pallas as pl
from jax.experimental.pallas import tpu as pltpu


def _round_up(x, m):
    return ((x + m - 1) // m) * m


# ----------------------------- Pallas kernels -------------------------------

def _fnet_l2_kernel(x_ref, w_ref, b_ref, o_ref):
    # patch-embed conv (as matmul, bf16 operands, K = 48 unpadded) + bias, then L2
    # normalize over channels: fmaps / sqrt(max(sum(fmaps**2, -1, keepdim), 1e-12))
    y = jnp.dot(x_ref[...], w_ref[...], preferred_element_type=jnp.float32)
    y = y + b_ref[...]
    inv = jax.lax.rsqrt(jnp.maximum(jnp.sum(y * y, axis=-1, keepdims=True), 1e-12))
    o_ref[...] = (y * inv).astype(o_ref.dtype)


def fnet_patch_embed_l2norm(patches, w, b, tile_m=512):
    # patches: (M, K=48) bf16, w: (48, C) bf16, b: (C,) f32.  Returns (M, C) f32.
    M, K = patches.shape
    Kw, C = w.shape
    assert K == Kw
    tile_m = max(8, min(tile_m, _round_up(M, 8)))
    m_pad = _round_up(M, tile_m)
    if m_pad != M:
        patches = jnp.pad(patches, ((0, m_pad - M), (0, 0)))
    out = pl.pallas_call(
        _fnet_l2_kernel,
        out_shape=jax.ShapeDtypeStruct((m_pad, C), jnp.float32),
        grid=(m_pad // tile_m,),
        in_specs=[
            pl.BlockSpec((tile_m, K), lambda i: (i, 0)),
            pl.BlockSpec((K, C), lambda i: (0, 0)),   # weights resident across the grid
            pl.BlockSpec((1, C), lambda i: (0, 0)),
        ],
        out_specs=pl.BlockSpec((tile_m, C), lambda i: (i, 0)),
        compiler_params=pltpu.CompilerParams(
            dimension_semantics=("parallel",),
            vmem_limit_bytes=16 * 1024 * 1024,
        ),
    )(patches, w, b.reshape(1, C))
    return out[:M]


def _erf_poly(x):
    # Abramowitz & Stegun 7.1.26, |err| <= 1.5e-7 — erf using only basic VPU/EUP ops
    # (avoids relying on a lax.erf lowering inside Mosaic).
    ax = jnp.abs(x)
    t = 1.0 / (1.0 + 0.3275911 * ax)
    poly = t * (0.254829592 + t * (-0.284496736 + t * (1.421413741
                + t * (-1.453152027 + t * 1.061405429))))
    y = 1.0 - poly * jnp.exp(-ax * ax)
    return jnp.where(x >= 0, y, -y)


def _gelu_exact(x):
    # matches PyTorch nn.GELU() (erf form), not the tanh approximation
    return 0.5 * x * (1.0 + _erf_poly(x * 0.7071067811865476))


def _fused_corr_mlp_kernel(x_ref, w1_ref, b1_ref, w2_ref, b2_ref, o_ref, xs_ref):
    tn, r2, _ = x_ref.shape
    kp = xs_ref.shape[1]
    wpad = kp // r2                                        # 128 (lane-aligned row pitch)

    # Scratch persists across grid steps; its pad columns (w >= r2 of each 128-block) are
    # never written by the row stores, so zero them ONCE.  The matching W1 rows are zero,
    # so this only guards against 0 * NaN from uninitialized VMEM.  The grid axis is
    # "arbitrary" (sequential), so step 0 is guaranteed to run first.
    @pl.when(pl.program_id(0) == 0)
    def _init():
        xs_ref[...] = jnp.zeros_like(xs_ref)

    feats = x_ref[...]                                     # (tn, r2, C) bf16, pre-masked
    # corr volume for this row tile, f32 accumulation on the MXU (bf16 inputs).
    # feats is already multiplied by the {0,1} per-track mask, so this equals
    # mask * einsum(cf, cf) — exactly the reference einsum(cf, tf_masked).
    corr = jnp.einsum("nhc,nwc->nhw", feats, feats,
                      preferred_element_type=jnp.float32)  # (tn, r2, r2)

    # Lane-aligned flatten: row h lands at lane offset h*128 (unshuffled store); the corr
    # volume never makes an HBM round trip.
    for h in range(r2):
        xs_ref[:, h * wpad:h * wpad + r2] = corr[:, h, :].astype(xs_ref.dtype)

    x = xs_ref[...]                                        # (tn, r2*128) bf16
    h1 = jnp.dot(x, w1_ref[...], preferred_element_type=jnp.float32) + b1_ref[...]
    h1 = _gelu_exact(h1)
    y = jnp.dot(h1.astype(jnp.bfloat16), w2_ref[...],
                preferred_element_type=jnp.float32) + b2_ref[...]
    o_ref[...] = y.astype(o_ref.dtype)


def fused_corr_mlp(feats, w1p, b1, w2, b2, tile_n=256):
    # feats: (M, R2, C) bf16 masked support features with M = levels*B*N (all pyramid
    # levels batched into one pallas_call).  Returns (M, Co) f32.
    # w1p: (R2*128, H) bf16 — W1 reordered host-side so row index = h*128 + w, rows with
    # w >= R2 zero.
    M, R2, C = feats.shape
    Kp, H = w1p.shape
    Co = w2.shape[1]
    assert Kp % R2 == 0 and Kp // R2 >= R2
    tile_n = max(8, min(tile_n, _round_up(M, 8)))
    m_pad = _round_up(M, tile_n)
    if m_pad != M:
        feats = jnp.pad(feats, ((0, m_pad - M), (0, 0), (0, 0)))
    out = pl.pallas_call(
        _fused_corr_mlp_kernel,
        out_shape=jax.ShapeDtypeStruct((m_pad, Co), jnp.float32),
        grid=(m_pad // tile_n,),
        in_specs=[
            pl.BlockSpec((tile_n, R2, C), lambda i: (i, 0, 0)),
            pl.BlockSpec((Kp, H), lambda i: (0, 0)),    # w1 resident: no re-stream per tile
            pl.BlockSpec((1, H), lambda i: (0, 0)),
            pl.BlockSpec((H, Co), lambda i: (0, 0)),
            pl.BlockSpec((1, Co), lambda i: (0, 0)),
        ],
        out_specs=pl.BlockSpec((tile_n, Co), lambda i: (i, 0)),
        scratch_shapes=[pltpu.VMEM((tile_n, Kp), jnp.bfloat16)],
        compiler_params=pltpu.CompilerParams(
            # "arbitrary": scratch pad-column init on step 0 must precede later steps.
            dimension_semantics=("arbitrary",),
            vmem_limit_bytes=32 * 1024 * 1024,
        ),
    )(feats, w1p, b1, w2, b2)
    return out[:M]


# ------------------------------- JAX glue -----------------------------------

def _resize_bilinear_ac(x, out_h, out_w):
    # F.interpolate(..., mode='bilinear', align_corners=True) on NCHW
    B, C, H, W = x.shape
    ys = jnp.linspace(0.0, H - 1.0, out_h)
    xs = jnp.linspace(0.0, W - 1.0, out_w)
    y0 = jnp.floor(ys).astype(jnp.int32)
    y1 = jnp.minimum(y0 + 1, H - 1)
    wy = (ys - y0.astype(ys.dtype))[None, None, :, None]
    x0 = jnp.floor(xs).astype(jnp.int32)
    x1 = jnp.minimum(x0 + 1, W - 1)
    wx = (xs - x0.astype(xs.dtype))[None, None, None, :]
    top = x[:, :, y0, :]
    bot = x[:, :, y1, :]
    v = top * (1.0 - wy) + bot * wy
    left = v[:, :, :, x0]
    right = v[:, :, :, x1]
    return left * (1.0 - wx) + right * wx


def _bilinear_sample_2d(fmap, pts):
    # fmap: (C, H, W); pts: (P, 2) as (x, y) pixel coords.
    # Matches grid_sample(align_corners=True, padding_mode='border') at pixel coordinates
    # (the cotracker bilinear_sampler defaults).  Gather stays in JAX.
    C, H, W = fmap.shape
    x = jnp.clip(pts[:, 0], 0.0, W - 1.0)
    y = jnp.clip(pts[:, 1], 0.0, H - 1.0)
    x0 = jnp.floor(x).astype(jnp.int32)
    y0 = jnp.floor(y).astype(jnp.int32)
    x1 = jnp.minimum(x0 + 1, W - 1)
    y1 = jnp.minimum(y0 + 1, H - 1)
    wx = x - x0.astype(x.dtype)
    wy = y - y0.astype(y.dtype)
    v00 = fmap[:, y0, x0]
    v01 = fmap[:, y0, x1]
    v10 = fmap[:, y1, x0]
    v11 = fmap[:, y1, x1]
    top = v00 * (1.0 - wx) + v01 * wx
    bot = v10 * (1.0 - wx) + v11 * wx
    return top * (1.0 - wy) + bot * wy  # (C, P)


def _sample_support_feats(fmaps, coords_xy, r):
    # fmaps: (B, 1, C, H, W); coords_xy: (B, N, 2) in that level's feature-pixel coords.
    # Returns (B, N, R2, C).  The (2r+1)^2 grid is flattened x-offset-major / y-offset-minor,
    # which matches get_support_points (delta = (0, dy[i], dx[j]) added to (t, x, y)); the
    # same ordering is used for both the template and correlation features, so the 49x49
    # corr volume flattening matches the reference einsum/reshape.
    B = fmaps.shape[0]
    d = jnp.arange(-r, r + 1, dtype=jnp.float32)
    ox, oy = jnp.meshgrid(d, d, indexing="ij")
    offs = jnp.stack([ox, oy], axis=-1).reshape(-1, 2)            # (R2, 2)
    pts = coords_xy[:, :, None, :] + offs[None, None, :, :]       # (B, N, R2, 2)
    N, R2 = pts.shape[1], pts.shape[2]
    feats = jax.vmap(_bilinear_sample_2d)(fmaps[:, 0], pts.reshape(B, N * R2, 2))
    C = feats.shape[1]
    feats = feats.reshape(B, C, N, R2)
    return jnp.transpose(feats, (0, 2, 3, 1))


def _avg_pool2x2(fmaps):
    # F.avg_pool2d(x, 2, stride=2) on (B, T, C, H, W)
    B, T, C, H, W = fmaps.shape
    H2, W2 = H // 2, W // 2
    x = fmaps[:, :, :, : H2 * 2, : W2 * 2].reshape(B, T, C, H2, 2, W2, 2)
    return x.mean(axis=(4, 6))


# ------------------------------ LiteTracker ---------------------------------

class LiteTracker:
    def __init__(self, window_len=16, stride=4, corr_radius=3, corr_levels=4,
                 model_resolution=(32, 48), seed=0):
        self.window_len = window_len
        self.stride = stride
        self.corr_radius = corr_radius
        self.corr_levels = corr_levels
        self.latent_dim = 128
        self.inv_sigmoid_true_val = 4.6
        self.model_resolution = model_resolution  # (H, W) as used by the PyTorch code

        r2 = (2 * corr_radius + 1) ** 2
        assert r2 <= 128, "lane-aligned corr flatten assumes (2r+1)^2 <= 128"
        key = jax.random.PRNGKey(seed)
        k = jax.random.split(key, 4)

        # TODO(synk): BasicEncoder (fnet) definition was not provided; stand-in is a
        # deterministic stride-4 patch-embedding conv (3 -> latent_dim).
        cin_patch = 3 * stride * stride                            # 48, no K padding
        fnet_w = jax.random.normal(k[0], (cin_patch, self.latent_dim), jnp.float32) * 0.05
        self.fnet_w = fnet_w.astype(jnp.bfloat16)
        self.fnet_b = jnp.zeros((self.latent_dim,), jnp.float32)

        # corr_mlp: Mlp(in=49*49, hidden=384, out=256), exact-erf GELU.
        # W1 rows reordered to the lane-aligned flatten layout: row index = h*128 + w,
        # rows with w >= 49 are zero.
        self._wpad = 128
        w1 = jax.random.normal(k[1], (r2 * r2, 384), jnp.float32) * 0.02
        w1_3d = w1.reshape(r2, r2, 384)
        w1_pad = jnp.zeros((r2, self._wpad, 384), jnp.float32).at[:, :r2, :].set(w1_3d)
        self.mlp_w1_p = w1_pad.reshape(r2 * self._wpad, 384).astype(jnp.bfloat16)
        self.mlp_b1 = jnp.zeros((1, 384), jnp.float32)
        self.mlp_w2 = (jax.random.normal(k[2], (384, 256), jnp.float32) * 0.02).astype(jnp.bfloat16)
        self.mlp_b2 = jnp.zeros((1, 256), jnp.float32)
        self.reset()

    def reset(self):
        self.online_ind = 0
        self.ema_flow_buffer = None
        self.corr_embs_buffer = None
        self.coords_buffer = None
        self.vis_buffer = None
        self.conf_buffer = None
        self.track_feat_cache = [None] * self.corr_levels

    def forward(self, frame, queries):
        # TODO(synk): only the first-frame (online_ind == 0) path is implemented; the
        # online_ind > 0 temporal update (posenc / time_emb / EfficientUpdateFormer) is
        # never reached on this call and those class definitions were not provided.
        assert self.online_ind == 0, "only the first-frame path is implemented"
        B, Cin, H0, W0 = frame.shape
        H, W = self.model_resolution
        N = queries.shape[1]
        s = self.stride
        r = self.corr_radius
        R2 = (2 * r + 1) ** 2
        L = self.corr_levels

        frame_r = _resize_bilinear_ac(frame.astype(jnp.float32), H, W)
        queries_scaled = queries.astype(jnp.float32)
        queries_scaled = queries_scaled.at[:, :, 1].multiply((W - 1) / (W0 - 1))
        queries_scaled = queries_scaled.at[:, :, 2].multiply((H - 1) / (H0 - 1))
        frame_n = 2.0 * (frame_r / 255.0) - 1.0

        queried_frames = queries_scaled[:, :, 0].astype(jnp.int32)   # (B, N)
        queried_coords = queries_scaled[..., 1:3] / s                # (B, N, 2) feature px

        # ---- fnet + channel L2 norm (Pallas, fused, K = 48, bf16 MXU) ----
        Hc, Wc = H // s, W // s
        patches = frame_n.reshape(B, Cin, Hc, s, Wc, s)
        patches = jnp.transpose(patches, (0, 2, 4, 1, 3, 5)).reshape(B * Hc * Wc, Cin * s * s)
        feat_rows = fnet_patch_embed_l2norm(patches.astype(jnp.bfloat16),
                                            self.fnet_w, self.fnet_b)  # (B*Hc*Wc, 128) f32
        fmaps = feat_rows.reshape(B, Hc, Wc, self.latent_dim)
        fmaps = jnp.transpose(fmaps, (0, 3, 1, 2)).reshape(B, 1, self.latent_dim, Hc, Wc)

        fmaps_pyramid = [fmaps]
        for _ in range(self.corr_levels - 1):
            fmaps = _avg_pool2x2(fmaps)
            fmaps_pyramid.append(fmaps)

        # ---- support-point features per level; on frame 0 the same sampled grid serves
        #      both as the template cache (masked) and the correlation features ----
        is_now = (queried_frames == self.online_ind)                  # (B, N)
        mask = is_now.astype(jnp.float32)[:, :, None, None]
        self.track_feat_cache = []
        for i in range(self.corr_levels):
            sf = _sample_support_feats(fmaps_pyramid[i], queried_coords / (2.0 ** i), r)
            self.track_feat_cache.append(sf * mask)                   # (B, N, R2, C)

        # ---- forward_window, iteration 0: corr volume + corr MLP, ALL levels in ONE call.
        #      corr = einsum(cf, cf*mask) = einsum(cf*mask, cf*mask) since mask in {0,1},
        #      so only the masked feature tensor is streamed (half the HBM traffic). ----
        feats_all = jnp.stack(self.track_feat_cache, 0).reshape(L * B * N, R2, self.latent_dim)
        emb = fused_corr_mlp(feats_all.astype(jnp.bfloat16), self.mlp_w1_p, self.mlp_b1,
                             self.mlp_w2, self.mlp_b2)                # (L*B*N, 256)
        emb = emb.reshape(L, B, N, -1)
        corr_embs = jnp.transpose(emb, (1, 2, 0, 3)).reshape(B, 1, N, -1)  # concat over levels

        coords = queried_coords[:, None]                              # (B, 1, N, 2)
        vis = jnp.where(is_now[:, None, :, None],
                        jnp.float32(self.inv_sigmoid_true_val), jnp.float32(0.0))  # (B,1,N,1)
        conf = jnp.where(is_now[:, None, :, None],
                         jnp.float32(self.inv_sigmoid_true_val), jnp.float32(0.0))

        # state buffers (as in PyTorch forward_window for online_ind == 0)
        self.coords_buffer = coords
        self.vis_buffer = vis
        self.conf_buffer = conf
        self.corr_embs_buffer = corr_embs
        self.ema_flow_buffer = jnp.zeros_like(coords)

        coords_out = coords * float(s)                                # model-res pixels
        viss = vis[..., 0]
        confs = conf[..., 0]

        coords_out = coords_out.at[..., 0].multiply((W0 - 1) / (W - 1))
        coords_out = coords_out.at[..., 1].multiply((H0 - 1) / (H - 1))
        viss = jax.nn.sigmoid(viss) * jax.nn.sigmoid(confs)
        confs = jax.nn.sigmoid(confs)
        viss = viss > 0.6

        self.online_ind += 1
        return coords_out, viss, confs


# --------------------------------- main --------------------------------------

if __name__ == "__main__":
    key = jax.random.PRNGKey(0)
    kf, kq1, kq2, kq3 = jax.random.split(key, 4)

    B, N = 2, 8
    H0, W0 = 24, 32
    frame = jax.random.uniform(kf, (B, 3, H0, W0), jnp.float32, 0.0, 255.0)
    qx = jax.random.uniform(kq1, (B, N, 1), jnp.float32, 0.0, float(W0 - 1))
    qy = jax.random.uniform(kq2, (B, N, 1), jnp.float32, 0.0, float(H0 - 1))
    qframe = (jax.random.uniform(kq3, (B, N, 1)) > 0.75).astype(jnp.float32)  # some frame-1 queries
    queries = jnp.concatenate([qframe, qx, qy], axis=-1)                      # (B, N, 3)

    model = LiteTracker(model_resolution=(32, 48), stride=4, corr_radius=3, corr_levels=4)
    coords, viss, confs = model.forward(frame, queries)
    jax.block_until_ready((coords, viss, confs, model.corr_embs_buffer))

    assert coords.shape == (B, 1, N, 2)
    assert viss.shape == (B, 1, N) and viss.dtype == jnp.bool_
    assert confs.shape == (B, 1, N)
    assert model.corr_embs_buffer.shape == (B, 1, N, 4 * 256)
    assert bool(jnp.all(jnp.isfinite(coords)))
    assert bool(jnp.all(jnp.isfinite(model.corr_embs_buffer)))
    print("KERNEL_OK")
</pallas_src>

<mosaic_0001>
module attributes {stable_mosaic.version = 11 : i64} {
  func.func @_fnet_l2_kernel(%arg0: i32, %arg1: memref<192x48xbf16, #tpu.memory_space<vmem>>, %arg2: memref<48x128xbf16, #tpu.memory_space<vmem>>, %arg3: memref<1x128xf32, #tpu.memory_space<vmem>>, %arg4: memref<192x128xf32, #tpu.memory_space<vmem>>) attributes {dimension_semantics = [#tpu.dimension_semantics<parallel>], iteration_bounds = array<i64: 1>, scalar_prefetch = 0 : i64, scratch_operands = 0 : i64, tpu.core_type = #tpu.core_type<tc>, window_params = [{transform_indices = @transform_0, window_bounds = array<i64: 192, 48>}, {pipeline_mode = #tpu.pipeline_mode<synchronous>, transform_indices = @transform_1, window_bounds = array<i64: 48, 128>}, {pipeline_mode = #tpu.pipeline_mode<synchronous>, transform_indices = @transform_2, window_bounds = array<i64: 1, 128>}, {transform_indices = @transform_3, window_bounds = array<i64: 192, 128>}]} {
    %c0 = arith.constant 0 : index
    %c0_0 = arith.constant 0 : index
    %0 = vector.load %arg1[%c0, %c0_0] : memref<192x48xbf16, #tpu.memory_space<vmem>>, vector<192x48xbf16>
    %c0_1 = arith.constant 0 : index
    %c0_2 = arith.constant 0 : index
    %1 = vector.load %arg2[%c0_1, %c0_2] : memref<48x128xbf16, #tpu.memory_space<vmem>>, vector<48x128xbf16>
    %cst = arith.constant dense<0.000000e+00> : vector<192x128xf32>
    %2 = tpu.matmul %0, %1, %cst {dimension_numbers = #tpu.dot_dimension_numbers<[1], [0], [0], [1], [0, 0, 1, 1], [], []>} : vector<192x48xbf16>, vector<48x128xbf16>, vector<192x128xf32> -> vector<192x128xf32>
    %c0_3 = arith.constant 0 : index
    %c0_4 = arith.constant 0 : index
    %3 = vector.load %arg3[%c0_3, %c0_4] : memref<1x128xf32, #tpu.memory_space<vmem>>, vector<1x128xf32>
    %4 = vector.broadcast %3 : vector<1x128xf32> to vector<192x128xf32>
    %5 = arith.addf %2, %4 : vector<192x128xf32>
    %6 = arith.mulf %5, %5 : vector<192x128xf32>
    %cst_5 = arith.constant dense<0.000000e+00> : vector<192xf32>
    %7 = vector.multi_reduction <add>, %6, %cst_5 [1] : vector<192x128xf32> to vector<192xf32>
    %8 = vector.shape_cast %7 : vector<192xf32> to vector<192x1xf32>
    %cst_6 = arith.constant 9.99999996E-13 : f32
    %9 = vector.broadcast %cst_6 : f32 to vector<192x1xf32>
    %10 = arith.maximumf %8, %9 : vector<192x1xf32>
    %11 = math.rsqrt %10 : vector<192x1xf32>
    %12 = vector.broadcast %11 : vector<192x1xf32> to vector<192x128xf32>
    %13 = arith.mulf %5, %12 : vector<192x128xf32>
    %c0_7 = arith.constant 0 : index
    %c0_8 = arith.constant 0 : index
    %14 = vector.load %arg4[%c0_7, %c0_8] : memref<192x128xf32, #tpu.memory_space<vmem>>, vector<192x128xf32>
    tpu.vector_store %arg4[%c0_7, %c0_8], %13 {strides = array<i32>} : memref<192x128xf32, #tpu.memory_space<vmem>>, vector<192x128xf32>,
    return
  }
  func.func @transform_0(%arg0: i32) -> (i32, i32) {
    %c0_i32 = arith.constant 0 : i32
    %c0_i32_0 = arith.constant 0 : i32
    return %arg0, %c0_i32 : i32, i32
  }
  func.func @transform_1(%arg0: i32) -> (i32, i32) {
    %c0_i32 = arith.constant 0 : i32
    %c0_i32_0 = arith.constant 0 : i32
    %c0_i32_1 = arith.constant 0 : i32
    return %c0_i32, %c0_i32_0 : i32, i32
  }
  func.func @transform_2(%arg0: i32) -> (i32, i32) {
    %c0_i32 = arith.constant 0 : i32
    %c0_i32_0 = arith.constant 0 : i32
    %c0_i32_1 = arith.constant 0 : i32
    return %c0_i32, %c0_i32_0 : i32, i32
  }
  func.func @transform_3(%arg0: i32) -> (i32, i32) {
    %c0_i32 = arith.constant 0 : i32
    %c0_i32_0 = arith.constant 0 : i32
    return %arg0, %c0_i32 : i32, i32
  }
}

</mosaic_0001>

<bundles_post_ra>
// kernel: tpu_custom_call.1
= control target key start
LH: loop header
LB: loop body
LE: loop exit
PB: predicated region body
PF: predicated region fallthrough
CT: control target
= control target key end

     0   :  { %vm131_vm0 = vcmask 392192   ;;  %s891_s0 = inlined_call_operand.vmem [shape: bf16[192,48], index: 0, kind: input, shape index: {}]   ;;  %s892_s1 = inlined_call_operand.vmem [shape: bf16[48,128], index: 1, kind: input, shape index: {}]   ;;  %s893_s2 = inlined_call_operand.vmem [shape: f32[1,128], index: 2, kind: input, shape index: {}]   ;;  %s894_s3 = inlined_call_operand.hbm [shape: f32[192,128], index: 3, kind: output, shape index: {}]  }
   0x1   :  { %v563_v0 = vld [vmem:[%s892_s1] sm:$0xff]   ;;  %v564_v1 = vld [vmem:[%s892_s1 + $0x8] sm:$0xff]   ;;  %v565_v2 = vld [vmem:[%s892_s1 + $0x10] sm:$0xff]  }
   0x2   :  { %524 = vmatprep.subr.bf16.mxu0 %v563_v0  ;;  %554 = vmatprep.subr.bf16.mxu1 %v563_v0  ;;  %v566_v3 = vld [vmem:[%s891_s0] sm:$0xff]   ;;  %v567_v4 = vld [vmem:[%s891_s0 + $0x30] sm:$0xff]   ;;  %v568_v5 = vld [vmem:[%s891_s0 + $0x8] sm:$0xff]  }
   0x3   :  { %525 = vmatpush3.bf16.msra.mxu0 %v563_v0  ;;  %557 = vmatpush3.bf16.msra.mxu1 %v563_v0  ;;  %v569_v6 = vld [vmem:[%s891_s0 + $0x38] sm:$0xff]   ;;  %v570_v7 = vld [vmem:[%s891_s0 + $0x10] sm:$0xff]   ;;  %v572_v8 = vld [vmem:[%s891_s0 + $0x40] sm:$0xff]  }
   0x4   :  { %526 = vmatprep.subr.bf16.mxu0 %v564_v1  ;;  %555 = vmatprep.subr.bf16.mxu1 %v564_v1 }
   0x5   :  { %530 = vmatprep.mubr.msk.bf16.mxu0 %vm131_vm0, %v566_v3  ;;  %542 = vmatprep.mubr.msk.bf16.mxu1 %vm131_vm0, %v567_v4 }
   0x7   :  { %527 = vmatpush3.bf16.msra.mxu0 %v564_v1  ;;  %558 = vmatpush3.bf16.msra.mxu1 %v564_v1 }
   0x8   :  { %528 = vmatprep.subr.bf16.mxu0 %v565_v2  ;;  %556 = vmatprep.subr.bf16.mxu1 %v565_v2 }
   0xb   :  { %529 = vmatpush3.bf16.msra.mxu0 %v565_v2  ;;  %559 = vmatpush3.bf16.msra.mxu1 %v565_v2 }
   0xe   :  { %531 = vmatmul.mubr.msk.bf16.vlgmr.msra.gmra.mrb[0].mxu0 %vm131_vm0, %v568_v5  ;;  %543 = vmatmul.mubr.msk.bf16.vlgmr.msra.gmra.mrb[0].mxu1 %vm131_vm0, %v569_v6 }
   0xf   :  { %534 = vmatprep.mubr.msk.bf16.mxu0 %vm131_vm0, %v570_v7  ;;  %546 = vmatprep.mubr.msk.bf16.mxu1 %vm131_vm0, %v572_v8 }
  0x10   :  { %8 = vsyncpa [#allocation3], 0  ;;  %v571_v9 = vld [vmem:[%s891_s0 + $0x18] sm:$0xff]   ;;  %v573_v10 = vld [vmem:[%s891_s0 + $0x48] sm:$0xff]  }
  0x11   :  { %v574_v11 = vld [vmem:[%s891_s0 + $0x20] sm:$0xff]   ;;  %v576_v12 = vld [vmem:[%s891_s0 + $0x50] sm:$0xff]   ;;  %v575_v13 = vld [vmem:[%s891_s0 + $0x28] sm:$0xff]  }
  0x12   :  { %v577_v14 = vld [vmem:[%s891_s0 + $0x58] sm:$0xff]   ;;  %v733_v15 = vld [vmem:[%s893_s2] ss:$0 sm:$0xff]  ;;  %s650_s0 = smov [#allocation2]  }
  0x13   :  { %s470_s2 = sshll.u32 %s650_s0, 4  ;;  %s471_s2 = int_to_ptr.vmem [resolvable:$true] %s470_s2 }
  0x14   :  { %s626_s16 = scalar_lea.vmem %s471_s2, 3072  ;;  %p631_p1 = scmp.lt.s32.totalorder %s471_s2, %s471_s2 }
  0x15   :  { %p627_p0 = scmp.ne.s32.totalorder %s471_s2, %s626_s16  ;;  %p632_p2 = scmp.lt.s32.totalorder %s626_s16, %s626_s16 }
  0x16   :  { %535 = vmatmul.mubr.msk.bf16.gmra.mrb[4].mxu0 %vm131_vm0, %v571_v9  ;;  %547 = vmatmul.mubr.msk.bf16.gmra.mrb[4].mxu1 %vm131_vm0, %v573_v10 }
  0x17   :  { %538 = vmatprep.mubr.msk.bf16.mxu0 %vm131_vm0, %v574_v11  ;;  %550 = vmatprep.mubr.msk.bf16.mxu1 %vm131_vm0, %v576_v12  ;;  %p633_p3 = por %p632_p2, %p631_p1 }
  0x19   :  { %p634_p4 = pnand %p633_p3, %p627_p0 }
  0x1e   :  { %539 = vmatmul.mubr.msk.bf16.gmra.mrb[8].mxu0 %vm131_vm0, %v575_v13  ;;  %551 = vmatmul.mubr.msk.bf16.gmra.mrb[8].mxu1 %vm131_vm0, %v577_v14 }
  0xe1   :  { %v532_v16 = vpop.f32.mrb[0].mxu0  ;;  %v544_v17 = vpop.f32.mrb[0].mxu1 }
  0xe2   :  { %v736_v18 = vadd.f32 %v532_v16, %v733_v15  ;;  %v739_v19 = vadd.f32 %v544_v17, %v733_v15  ;;  %v202_v20 = vpop.f32.mrb[1].mxu0  ;;  %v250_v21 = vpop.f32.mrb[1].mxu1 }
  0xe3   :  { %v533_v22 = vpop.f32.mrb[2].mxu0  ;;  %v545_v23 = vpop.f32.mrb[2].mxu1  ;;  %v742_v24 = vadd.f32 %v733_v15, %v202_v20  ;;  %v752_v30 = vadd.f32 %v733_v15, %v250_v21 }
  0xe4   :  { %v745_v25 = vadd.f32 %v533_v22, %v733_v15  ;;  %v205_v26 = vpop.f32.mrb[3].mxu0  ;;  %v253_v27 = vpop.f32.mrb[3].mxu1  ;;  %v311_v28 = vmul.f32 %v739_v19, %v739_v19  ;;  %v299_v29 = vmul.f32 %v736_v18, %v736_v18  ;;  %v755_v31 = vadd.f32 %v545_v23, %v733_v15 }
  0xe5   :  { %v297_v33 = vmul.f32 %v742_v24, %v742_v24  ;;  %v762_v40 = vadd.f32 %v733_v15, %v205_v26  ;;  %v765_v41 = vadd.f32 %v733_v15, %v253_v27  ;;  %v309_v43 = vmul.f32 %v752_v30, %v752_v30 }
  0xe6   :  { %349 = vadd.xlane.f32.xlu0 %v311_v28  ;;  %325 = vadd.xlane.f32.xlu1 %v299_v29  ;;  %v300_v32 = vmul.f32 %v745_v25, %v745_v25  ;;  %v312_v42 = vmul.f32 %v755_v31, %v755_v31 }
  0xe7   :  { %v310_v48 = vmul.f32 %v765_v41, %v765_v41  ;;  %v298_v49 = vmul.f32 %v762_v40, %v762_v40 }
  0xe9   :  { %v536_v34 = vpop.f32.mrb[4].mxu0  ;;  %v548_v35 = vpop.f32.mrb[4].mxu1 }
  0xea   :  { %327 = vadd.xlane.f32.xlu1 %v300_v32  ;;  %321 = vadd.xlane.f32.xlu0 %v297_v33  ;;  %v218_v36 = vpop.f32.mrb[5].mxu0  ;;  %v266_v37 = vpop.f32.mrb[5].mxu1  ;;  %v772_v46 = vadd.f32 %v536_v34, %v733_v15  ;;  %v782_v56 = vadd.f32 %v548_v35, %v733_v15 }
  0xeb   :  { %v537_v38 = vpop.f32.mrb[6].mxu0  ;;  %v549_v39 = vpop.f32.mrb[6].mxu1  ;;  %v792_v62 = vadd.f32 %v733_v15, %v218_v36  ;;  %v802_v2 = vadd.f32 %v733_v15, %v266_v37 }
  0xec   :  { %v221_v44 = vpop.f32.mrb[7].mxu0  ;;  %v269_v45 = vpop.f32.mrb[7].mxu1  ;;  %v775_v47 = vadd.f32 %v537_v38, %v733_v15  ;;  %v785_v57 = vadd.f32 %v549_v39, %v733_v15  ;;  %v303_v59 = vmul.f32 %v772_v46, %v772_v46  ;;  %v315_v1 = vmul.f32 %v782_v56, %v782_v56 }
  0xed   :  { %v795_v63 = vadd.f32 %v733_v15, %v221_v44  ;;  %v805_v3 = vadd.f32 %v733_v15, %v269_v45  ;;  %v301_v5 = vmul.f32 %v792_v62, %v792_v62  ;;  %v313_v9 = vmul.f32 %v802_v2, %v802_v2 }
  0xee   :  { %351 = vadd.xlane.f32.xlu1 %v312_v42  ;;  %345 = vadd.xlane.f32.xlu0 %v309_v43  ;;  %v304_v58 = vmul.f32 %v775_v47, %v775_v47  ;;  %v316_v0 = vmul.f32 %v785_v57, %v785_v57 }
  0xef   :  { %v302_v4 = vmul.f32 %v795_v63, %v795_v63  ;;  %v314_v8 = vmul.f32 %v805_v3, %v805_v3 }
  0xf1   :  { %v540_v50 = vpop.f32.mrb[8].mxu0  ;;  %v552_v51 = vpop.f32.mrb[8].mxu1 }
  0xf2   :  { %347 = vadd.xlane.f32.xlu1 %v310_v48  ;;  %323 = vadd.xlane.f32.xlu0 %v298_v49  ;;  %v234_v52 = vpop.f32.mrb[9].mxu0  ;;  %v282_v53 = vpop.f32.mrb[9].mxu1  ;;  %v812_v6 = vadd.f32 %v540_v50, %v733_v15  ;;  %v842_v21 = vadd.f32 %v552_v51, %v733_v15 }
  0xf3   :  { %v541_v54 = vpop.f32.mrb[10].mxu0  ;;  %v553_v55 = vpop.f32.mrb[10].mxu1  ;;  %v822_v10 = vadd.f32 %v733_v15, %v234_v52  ;;  %v832_v14 = vadd.f32 %v733_v15, %v282_v53 }
  0xf4   :  { %v237_v60 = vpop.f32.mrb[11].mxu0  ;;  %v285_v61 = vpop.f32.mrb[11].mxu1  ;;  %v815_v7 = vadd.f32 %v541_v54, %v733_v15  ;;  %v307_v13 = vmul.f32 %v812_v6, %v812_v6  ;;  %v845_v22 = vadd.f32 %v553_v55, %v733_v15  ;;  %v319_v28 = vmul.f32 %v842_v21, %v842_v21 }
  0xf5   :  { %v825_v11 = vadd.f32 %v733_v15, %v237_v60  ;;  %v835_v16 = vadd.f32 %v733_v15, %v285_v61  ;;  %v305_v20 = vmul.f32 %v822_v10, %v822_v10  ;;  %v317_v26 = vmul.f32 %v832_v14, %v832_v14 }
  0xf6   :  { %335 = vadd.xlane.f32.xlu1 %v304_v58  ;;  %333 = vadd.xlane.f32.xlu0 %v303_v59  ;;  %v308_v12 = vmul.f32 %v815_v7, %v815_v7  ;;  %v320_v27 = vmul.f32 %v845_v22, %v845_v22 }
  0xf7   :  { %v306_v17 = vmul.f32 %v825_v11, %v825_v11  ;;  %v318_v23 = vmul.f32 %v835_v16, %v835_v16 }
  0xfa   :  { %359 = vadd.xlane.f32.xlu1 %v316_v0  ;;  %357 = vadd.xlane.f32.xlu0 %v315_v1 }
  0xfe   :  { %331 = vadd.xlane.f32.xlu1 %v302_v4  ;;  %329 = vadd.xlane.f32.xlu0 %v301_v5 }
 0x102   :  { %355 = vadd.xlane.f32.xlu1 %v314_v8  ;;  %353 = vadd.xlane.f32.xlu0 %v313_v9 }
 0x106   :  { %343 = vadd.xlane.f32.xlu1 %v308_v12  ;;  %341 = vadd.xlane.f32.xlu0 %v307_v13 }
 0x10a   :  { %339 = vadd.xlane.f32.xlu1 %v306_v17  ;;  %337 = vadd.xlane.f32.xlu0 %v305_v20 }
 0x10e   :  { %363 = vadd.xlane.f32.xlu1 %v318_v23  ;;  %361 = vadd.xlane.f32.xlu0 %v317_v26 }
 0x112   :  { %367 = vadd.xlane.f32.xlu1 %v320_v27  ;;  %365 = vadd.xlane.f32.xlu0 %v319_v28 }
 0x173   :  { %v350_v29 = vpop.xlane.xlu0 %349  ;;  %v326_v32 = vpop.xlane.xlu1 %325 }
 0x174   :  { %v383_v15 = vmax.f32 %v350_v29, 1e-12  ;;  %v371_v33 = vmax.f32 %v326_v32, 1e-12 }
 0x176   :  { %578 = vrsqrt.f32 %v383_v15 }
 0x177   :  { %580 = vrsqrt.f32 %v371_v33  ;;  %v328_v34 = vpop.xlane.xlu1 %327  ;;  %v322_v35 = vpop.xlane.xlu0 %321 }
 0x178   :  { %v372_v36 = vmax.f32 %v328_v34, 1e-12  ;;  %v369_v37 = vmax.f32 %v322_v35, 1e-12 }
 0x17a   :  { %582 = vrsqrt.f32 %v372_v36 }
 0x17b   :  { %584 = vrsqrt.f32 %v369_v37  ;;  %v352_v38 = vpop.xlane.xlu1 %351  ;;  %v346_v39 = vpop.xlane.xlu0 %345 }
 0x17c   :  { %v384_v42 = vmax.f32 %v352_v38, 1e-12  ;;  %v381_v43 = vmax.f32 %v346_v39, 1e-12 }
 0x17e   :  { %586 = vrsqrt.f32 %v384_v42 }
 0x17f   :  { %588 = vrsqrt.f32 %v381_v43  ;;  %v348_v44 = vpop.xlane.xlu1 %347  ;;  %v324_v45 = vpop.xlane.xlu0 %323 }
 0x180   :  { %v579_v48 = vpop.eup %578  ;;  %v382_v49 = vmax.f32 %v348_v44, 1e-12  ;;  %v370_v50 = vmax.f32 %v324_v45, 1e-12 }
 0x181   :  { %v581_v51 = vpop.eup %580  ;;  %v431_v52 = vmul.f32 %v579_v48, %v739_v19 }
 0x182   :  { %v419_v53 = vmul.f32 %v581_v51, %v736_v18  ;;  %590 = vrsqrt.f32 %v382_v49 }
 0x183   :  { %455 = vst [vmem:[#allocation2 + $0x70] sm:$0xff] %v431_v52  ;;  %592 = vrsqrt.f32 %v370_v50  ;;  %v336_v54 = vpop.xlane.xlu1 %335  ;;  %v334_v55 = vpop.xlane.xlu0 %333 }
 0x184   :  { %v583_v58 = vpop.eup %582  ;;  %443 = vst [vmem:[#allocation2 + $0x10] sm:$0xff] %v419_v53  ;;  %v376_v59 = vmax.f32 %v336_v54, 1e-12  ;;  %v375_v60 = vmax.f32 %v334_v55, 1e-12 }
 0x185   :  { %v585_v61 = vpop.eup %584  ;;  %v420_v0 = vmul.f32 %v583_v58, %v745_v25 }
 0x186   :  { %v417_v1 = vmul.f32 %v585_v61, %v742_v24  ;;  %594 = vrsqrt.f32 %v376_v59 }
 0x187   :  { %444 = vst [vmem:[#allocation2 + $0x18] sm:$0xff] %v420_v0  ;;  %596 = vrsqrt.f32 %v375_v60  ;;  %v360_v19 = vpop.xlane.xlu1 %359  ;;  %v358_v4 = vpop.xlane.xlu0 %357 }
 0x188   :  { %v587_v18 = vpop.eup %586  ;;  %441 = vst [vmem:[#allocation2] sm:$0xff] %v417_v1  ;;  %v388_v5 = vmax.f32 %v360_v19, 1e-12  ;;  %v387_v8 = vmax.f32 %v358_v4, 1e-12 }
 0x189   :  { %v589_v9 = vpop.eup %588  ;;  %v432_v12 = vmul.f32 %v587_v18, %v755_v31 }
 0x18a   :  { %v429_v13 = vmul.f32 %v589_v9, %v752_v30  ;;  %598 = vrsqrt.f32 %v388_v5 }
 0x18b   :  { %456 = vst [vmem:[#allocation2 + $0x78] sm:$0xff] %v432_v12  ;;  %600 = vrsqrt.f32 %v387_v8  ;;  %v332_v25 = vpop.xlane.xlu1 %331  ;;  %v330_v17 = vpop.xlane.xlu0 %329 }
 0x18c   :  { %v591_v24 = vpop.eup %590  ;;  %453 = vst [vmem:[#allocation2 + $0x60] sm:$0xff] %v429_v13  ;;  %v374_v20 = vmax.f32 %v332_v25, 1e-12  ;;  %v373_v23 = vmax.f32 %v330_v17, 1e-12 }
 0x18d   :  { %v593_v26 = vpop.eup %592  ;;  %v430_v27 = vmul.f32 %v591_v24, %v765_v41 }
 0x18e   :  { %v418_v28 = vmul.f32 %v593_v26, %v762_v40  ;;  %602 = vrsqrt.f32 %v374_v20 }
 0x18f   :  { %454 = vst [vmem:[#allocation2 + $0x68] sm:$0xff] %v430_v27  ;;  %604 = vrsqrt.f32 %v373_v23  ;;  %v356_v31 = vpop.xlane.xlu1 %355  ;;  %v354_v29 = vpop.xlane.xlu0 %353 }
 0x190   :  { %v595_v30 = vpop.eup %594  ;;  %442 = vst [vmem:[#allocation2 + $0x8] sm:$0xff] %v418_v28  ;;  %v386_v32 = vmax.f32 %v356_v31, 1e-12  ;;  %v385_v15 = vmax.f32 %v354_v29, 1e-12 }
 0x191   :  { %v597_v33 = vpop.eup %596  ;;  %v424_v34 = vmul.f32 %v595_v30, %v775_v47 }
 0x192   :  { %v423_v35 = vmul.f32 %v597_v33, %v772_v46  ;;  %606 = vrsqrt.f32 %v386_v32 }
 0x193   :  { %448 = vst [vmem:[#allocation2 + $0x38] sm:$0xff] %v424_v34  ;;  %608 = vrsqrt.f32 %v385_v15  ;;  %v344_v41 = vpop.xlane.xlu1 %343  ;;  %v342_v36 = vpop.xlane.xlu0 %341 }
 0x194   :  { %v599_v40 = vpop.eup %598  ;;  %447 = vst [vmem:[#allocation2 + $0x30] sm:$0xff] %v423_v35  ;;  %v380_v37 = vmax.f32 %v344_v41, 1e-12  ;;  %v379_v38 = vmax.f32 %v342_v36, 1e-12 }
 0x195   :  { %v601_v39 = vpop.eup %600  ;;  %v436_v42 = vmul.f32 %v599_v40, %v785_v57 }
 0x196   :  { %v435_v43 = vmul.f32 %v601_v39, %v782_v56  ;;  %610 = vrsqrt.f32 %v380_v37 }
 0x197   :  { %460 = vst [vmem:[#allocation2 + $0x98] sm:$0xff] %v436_v42  ;;  %612 = vrsqrt.f32 %v379_v38  ;;  %v340_v47 = vpop.xlane.xlu1 %339  ;;  %v338_v44 = vpop.xlane.xlu0 %337 }
 0x198   :  { %v603_v46 = vpop.eup %602  ;;  %459 = vst [vmem:[#allocation2 + $0x90] sm:$0xff] %v435_v43  ;;  %v378_v45 = vmax.f32 %v340_v47, 1e-12  ;;  %v377_v48 = vmax.f32 %v338_v44, 1e-12 }
 0x199   :  { %v605_v49 = vpop.eup %604  ;;  %v422_v50 = vmul.f32 %v603_v46, %v795_v63 }
 0x19a   :  { %v421_v51 = vmul.f32 %v605_v49, %v792_v62  ;;  %614 = vrsqrt.f32 %v378_v45 }
 0x19b   :  { %446 = vst [vmem:[#allocation2 + $0x28] sm:$0xff] %v422_v50  ;;  %616 = vrsqrt.f32 %v377_v48  ;;  %v364_v57 = vpop.xlane.xlu1 %363  ;;  %v362_v52 = vpop.xlane.xlu0 %361 }
 0x19c   :  { %v607_v56 = vpop.eup %606  ;;  %445 = vst [vmem:[#allocation2 + $0x20] sm:$0xff] %v421_v51  ;;  %v390_v53 = vmax.f32 %v364_v57, 1e-12  ;;  %v389_v54 = vmax.f32 %v362_v52, 1e-12 }
 0x19d   :  { %v609_v55 = vpop.eup %608  ;;  %v434_v58 = vmul.f32 %v607_v56, %v805_v3 }
 0x19e   :  { %v433_v59 = vmul.f32 %v609_v55, %v802_v2  ;;  %618 = vrsqrt.f32 %v390_v53 }
 0x19f   :  { %458 = vst [vmem:[#allocation2 + $0x88] sm:$0xff] %v434_v58  ;;  %620 = vrsqrt.f32 %v389_v54  ;;  %v368_v63 = vpop.xlane.xlu1 %367  ;;  %v366_v60 = vpop.xlane.xlu0 %365 }
 0x1a0   :  { %v611_v62 = vpop.eup %610  ;;  %457 = vst [vmem:[#allocation2 + $0x80] sm:$0xff] %v433_v59  ;;  %v392_v61 = vmax.f32 %v368_v63, 1e-12  ;;  %v391_v0 = vmax.f32 %v366_v60, 1e-12 }
 0x1a1   :  { %v613_v1 = vpop.eup %612  ;;  %v428_v19 = vmul.f32 %v611_v62, %v815_v7 }
 0x1a2   :  { %v427_v4 = vmul.f32 %v613_v1, %v812_v6  ;;  %622 = vrsqrt.f32 %v392_v61 }
 0x1a3   :  { %452 = vst [vmem:[#allocation2 + $0x58] sm:$0xff] %v428_v19  ;;  %624 = vrsqrt.f32 %v391_v0 }
 0x1a4   :  { %v615_v3 = vpop.eup %614  ;;  %451 = vst [vmem:[#allocation2 + $0x50] sm:$0xff] %v427_v4 }
 0x1a5   :  { %v617_v2 = vpop.eup %616  ;;  %v426_v18 = vmul.f32 %v615_v3, %v825_v11 }
 0x1a6   :  { %v425_v5 = vmul.f32 %v617_v2, %v822_v10 }
 0x1a7   :  { %450 = vst [vmem:[#allocation2 + $0x48] sm:$0xff] %v426_v18 }
 0x1a8   :  { %v619_v8 = vpop.eup %618  ;;  %449 = vst [vmem:[#allocation2 + $0x40] sm:$0xff] %v425_v5 }
 0x1a9   :  { %v621_v9 = vpop.eup %620  ;;  %v438_v12 = vmul.f32 %v619_v8, %v835_v16 }
 0x1aa   :  { %v437_v7 = vmul.f32 %v621_v9, %v832_v14 }
 0x1ab   :  { %462 = vst [vmem:[#allocation2 + $0xa8] sm:$0xff] %v438_v12 }
 0x1ac   :  { %v623_v6 = vpop.eup %622  ;;  %461 = vst [vmem:[#allocation2 + $0xa0] sm:$0xff] %v437_v7 }
 0x1ad   :  { %v625_v13 = vpop.eup %624  ;;  %v440_v25 = vmul.f32 %v623_v6, %v845_v22 }
 0x1ae   :  { %v439_v11 = vmul.f32 %v625_v13, %v842_v21 }
 0x1af   :  { %464 = vst [vmem:[#allocation2 + $0xb8] sm:$0xff] %v440_v25 }
 0x1b0   :  { %463 = vst [vmem:[#allocation2 + $0xb0] sm:$0xff] %v439_v11 }
 0x1b1   :  { %637 = shalt.err (!%p634_p4)
}
 0x1b2   :  { %s638_s19 = scalar_lea.hbm %s894_s3, 3072 }
 0x1b3   :  { %p639_p5 = scmp.ne.s32.totalorder %s894_s3, %s638_s19  ;;  %p642_p6 = scmp.lt.u32.totalorder %s638_s19, %s894_s3 }
 0x1b5   :  { %p644_p7 = pnand %p642_p6, %p639_p5 }
 0x1b7   :  { %647 = shalt.err (!%p644_p7)
}
 0x1b8   :  { %s651_s23 = smov 128   ;;  %s652_s24 = smov 8  }
 0x1b9   :  { %476 = dma.vmem_to_hbm [thread:$0]  %s471_s2, 3072, %s894_s3, [#allocation3], %s651_s23, %s651_s23, %s652_s24  }
 0x1ba   :  { %648 = dma.done.wait [#allocation3], 3072  }
 0x1bb   :  { %649 = vsyncadd [#allocation3], 4294964224 }
 0x1bc   :  { %480 = vsyncpa [#allocation3], 1 }

</bundles_post_ra>
